<compile_context>
chip_gen: v7x
topology: tpu7x:2x2x1
jax: 0.10.0
libtpu: 0.0.40
codegen_flags: <defaults>
</compile_context>

<pallas_src>
import jax
import jax.numpy as jnp
from jax.experimental import pallas as pl
from jax.experimental.pallas import tpu as pltpu

BN_EPS = 1e-5


def _round_up(x, m):
    return ((x + m - 1) // m) * m


def _bn(x, gamma, beta, mean, var):
    return (x - mean) * jax.lax.rsqrt(var + BN_EPS) * gamma + beta


# ---------------------------------------------------------------------------
# Kernel
# ---------------------------------------------------------------------------
def actor_kernel(obs_ref, act_ref, w1_ref, wa_ref, w2_ref, w3_ref, vec_ref,
                 out_ref):
    A = w3_ref.shape[1]            # action_dim (static)

    # Packed per-feature vectors (each a (1, H) row of the (8, H) operand).
    b1 = vec_ref[0:1, :]           # fc1 bias        (0.5 folded in)
    ba = vec_ref[1:2, :]           # action_fc bias  (0.5 folded in)
    s1 = vec_ref[2:3, :]           # BN1 scale
    t1 = vec_ref[3:4, :]           # BN1 shift
    b2 = vec_ref[4:5, :]           # fc2 bias        (0.3 and BN2 folded in)
    b3 = vec_ref[5:6, 0:A]         # fc3 bias        (0.1 folded in)

    obs = obs_ref[...]
    act = act_ref[...]

    # fc1 branch: relu then folded BN1 (scale/shift).
    a = jnp.dot(obs, w1_ref[...], preferred_element_type=jnp.float32) + b1
    a = jnp.maximum(a, 0.0) * s1 + t1

    # action branch.
    c = jnp.dot(act, wa_ref[...], preferred_element_type=jnp.float32) + ba
    c = jnp.maximum(c, 0.0)

    # merge -> fc2 (0.3 and BN2 pre-folded into w2/b2) -> tanh.
    h = a + c
    h = jnp.tanh(jnp.dot(h, w2_ref[...], preferred_element_type=jnp.float32) + b2)

    # dropout: identity (eval mode)

    # fc3 (0.1 pre-folded) -> tanh, emitted directly at action_dim width.
    out_ref[...] = jnp.tanh(
        jnp.dot(h, w3_ref[...], preferred_element_type=jnp.float32) + b3
    )


# ---------------------------------------------------------------------------
# Parameters
# ---------------------------------------------------------------------------
def init_params(key, observation_dim, action_dim, hidden=32):
    ks = jax.random.split(key, 12)

    def lin(k, fan_in, fan_out):
        kw, kb = jax.random.split(k)
        bound = 1.0 / jnp.sqrt(fan_in)
        w = jax.random.uniform(kw, (fan_in, fan_out), jnp.float32, -bound, bound)
        b = jax.random.uniform(kb, (1, fan_out), jnp.float32, -bound, bound)
        return w, b

    w1, b1 = lin(ks[0], observation_dim, hidden)
    wa, ba = lin(ks[1], action_dim, hidden)
    w2, b2 = lin(ks[2], hidden, hidden)
    w3, b3 = lin(ks[3], hidden, action_dim)

    # BatchNorm running-stat / affine params (deterministic, non-trivial).
    bn1_g = 1.0 + 0.1 * jax.random.normal(ks[4], (1, hidden), jnp.float32)
    bn1_b = 0.1 * jax.random.normal(ks[5], (1, hidden), jnp.float32)
    bn1_m = 0.05 * jax.random.normal(ks[6], (1, hidden), jnp.float32)
    bn1_v = 1.0 + 0.1 * jnp.abs(jax.random.normal(ks[7], (1, hidden), jnp.float32))

    bn2_g = 1.0 + 0.1 * jax.random.normal(ks[8], (1, hidden), jnp.float32)
    bn2_b = 0.1 * jax.random.normal(ks[9], (1, hidden), jnp.float32)
    bn2_m = 0.05 * jax.random.normal(ks[10], (1, hidden), jnp.float32)
    bn2_v = 1.0 + 0.1 * jnp.abs(jax.random.normal(ks[11], (1, hidden), jnp.float32))

    return dict(
        w1=w1, b1=b1, wa=wa, ba=ba,
        bn1_g=bn1_g, bn1_b=bn1_b, bn1_m=bn1_m, bn1_v=bn1_v,
        w2=w2, b2=b2,
        bn2_g=bn2_g, bn2_b=bn2_b, bn2_m=bn2_m, bn2_v=bn2_v,
        w3=w3, b3=b3,
    )


def fold_params(p):
    """One-time host-side folding of BN (eval mode) + constant scales."""
    s1 = p["bn1_g"] * jax.lax.rsqrt(p["bn1_v"] + BN_EPS)
    t1 = p["bn1_b"] - p["bn1_m"] * s1
    s2 = p["bn2_g"] * jax.lax.rsqrt(p["bn2_v"] + BN_EPS)
    t2 = p["bn2_b"] - p["bn2_m"] * s2

    H = p["w1"].shape[1]
    A = p["w3"].shape[1]

    w1f, b1f = 0.5 * p["w1"], 0.5 * p["b1"]          # relu commutes with +scale
    waf, baf = 0.5 * p["wa"], 0.5 * p["ba"]
    w2f = p["w2"] * (0.3 * s2)                        # fold 0.3 and BN2 scale
    b2f = 0.3 * p["b2"] * s2 + t2
    w3f = 0.1 * p["w3"]                               # (H, A): no column pad
    b3f = 0.1 * p["b3"]                               # (1, A)

    # b3 sits in the first A lanes of row 5 of the packed (8, H) vector block.
    b3row = jnp.zeros((1, H), jnp.float32).at[:, :A].set(b3f)
    vecs = jnp.concatenate(
        [b1f, baf, s1, t1, b2f, b3row, jnp.zeros((2, H), jnp.float32)], axis=0
    )                                                 # (8, H)

    return dict(w1=w1f, wa=waf, w2=w2f, w3=w3f, vecs=vecs,
                hidden=H, action_dim=A)


# ---------------------------------------------------------------------------
# Wrapper
# ---------------------------------------------------------------------------
def actor_forward(obs, act, fp, tile_b=2048):
    """Run the fused actor forward. `fp` comes from fold_params()."""
    B = obs.shape[0]
    H = fp["hidden"]
    A = fp["action_dim"]
    obs_dim = obs.shape[1]
    act_dim_in = act.shape[1]

    # Batch tiling: big tiles amortize per-grid-step overhead; no jnp.pad —
    # the last block simply overhangs (rows are independent, Pallas masks the
    # out-of-bounds output rows).
    tb = min(tile_b, _round_up(B, 8))
    if B > 1024:
        # v7x megacore: keep >= 2 grid blocks so "parallel" can shard the
        # batch across both TensorCores (no-op on single-TC v5e/v6e).
        tb = min(tb, _round_up(pl.cdiv(B, 2), 8))
    grid = pl.cdiv(B, tb)

    return pl.pallas_call(
        actor_kernel,
        out_shape=jax.ShapeDtypeStruct((B, A), jnp.float32),
        grid_spec=pltpu.PrefetchScalarGridSpec(
            num_scalar_prefetch=0,
            grid=(grid,),
            in_specs=[
                pl.BlockSpec((tb, obs_dim), lambda i: (i, 0)),
                pl.BlockSpec((tb, act_dim_in), lambda i: (i, 0)),
                # Weights / packed vectors: constant index_map -> VMEM-resident
                # across all batch tiles.
                pl.BlockSpec((obs_dim, H), lambda i: (0, 0)),
                pl.BlockSpec((act_dim_in, H), lambda i: (0, 0)),
                pl.BlockSpec((H, H), lambda i: (0, 0)),
                pl.BlockSpec((H, A), lambda i: (0, 0)),
                pl.BlockSpec((8, H), lambda i: (0, 0)),
            ],
            out_specs=pl.BlockSpec((tb, A), lambda i: (i, 0)),
        ),
        compiler_params=pltpu.CompilerParams(
            dimension_semantics=("parallel",),
            vmem_limit_bytes=32 * 1024 * 1024,
        ),
    )(obs, act, fp["w1"], fp["wa"], fp["w2"], fp["w3"], fp["vecs"])


# ---------------------------------------------------------------------------
# Pure-JAX reference (unfolded params, mirrors the PyTorch forward)
# ---------------------------------------------------------------------------
def actor_reference(obs, act, p):
    a = jnp.maximum(obs @ p["w1"] + p["b1"], 0.0) * 0.5
    a = _bn(a, p["bn1_g"], p["bn1_b"], p["bn1_m"], p["bn1_v"])
    c = jnp.maximum(act @ p["wa"] + p["ba"], 0.0) * 0.5
    h = a + c
    h = (h @ p["w2"] + p["b2"]) * 0.3
    h = jnp.tanh(_bn(h, p["bn2_g"], p["bn2_b"], p["bn2_m"], p["bn2_v"]))
    return jnp.tanh((h @ p["w3"] + p["b3"]) * 0.1)


if __name__ == "__main__":
    observation_dim = 16
    action_dim = 4
    batch = 8

    key = jax.random.PRNGKey(0)
    k_obs, k_act, k_par = jax.random.split(key, 3)

    obs = jax.random.normal(k_obs, (batch, observation_dim), jnp.float32)
    act = jax.random.normal(k_act, (batch, action_dim), jnp.float32)
    params = init_params(k_par, observation_dim, action_dim)
    folded = fold_params(params)

    out = actor_forward(obs, act, folded)
    out = jax.block_until_ready(out)

    ref = actor_reference(obs, act, params)
    assert out.shape == (batch, action_dim)
    assert jnp.allclose(out, ref, atol=1e-5, rtol=1e-5)

    print("KERNEL_OK")
</pallas_src>

<mosaic_0001>
module attributes {stable_mosaic.version = 11 : i64} {
  func.func @actor_kernel(%arg0: i32, %arg1: memref<8x16xf32, #tpu.memory_space<vmem>>, %arg2: memref<8x4xf32, #tpu.memory_space<vmem>>, %arg3: memref<16x32xf32, #tpu.memory_space<vmem>>, %arg4: memref<4x32xf32, #tpu.memory_space<vmem>>, %arg5: memref<32x32xf32, #tpu.memory_space<vmem>>, %arg6: memref<32x4xf32, #tpu.memory_space<vmem>>, %arg7: memref<8x32xf32, #tpu.memory_space<vmem>>, %arg8: memref<8x4xf32, #tpu.memory_space<vmem>>) attributes {dimension_semantics = [#tpu.dimension_semantics<parallel>], iteration_bounds = array<i64: 1>, scalar_prefetch = 0 : i64, scratch_operands = 0 : i64, tpu.core_type = #tpu.core_type<tc>, window_params = [{transform_indices = @transform_0, window_bounds = array<i64: 8, 16>}, {transform_indices = @transform_1, window_bounds = array<i64: 8, 4>}, {pipeline_mode = #tpu.pipeline_mode<synchronous>, transform_indices = @transform_2, window_bounds = array<i64: 16, 32>}, {pipeline_mode = #tpu.pipeline_mode<synchronous>, transform_indices = @transform_3, window_bounds = array<i64: 4, 32>}, {pipeline_mode = #tpu.pipeline_mode<synchronous>, transform_indices = @transform_4, window_bounds = array<i64: 32, 32>}, {pipeline_mode = #tpu.pipeline_mode<synchronous>, transform_indices = @transform_5, window_bounds = array<i64: 32, 4>}, {pipeline_mode = #tpu.pipeline_mode<synchronous>, transform_indices = @transform_6, window_bounds = array<i64: 8, 32>}, {transform_indices = @transform_7, window_bounds = array<i64: 8, 4>}]} {
    %c0 = arith.constant 0 : index
    %c0_0 = arith.constant 0 : index
    %0 = vector.load %arg7[%c0, %c0_0] : memref<8x32xf32, #tpu.memory_space<vmem>>, vector<1x32xf32>
    %c1 = arith.constant 1 : index
    %c0_1 = arith.constant 0 : index
    %1 = vector.load %arg7[%c1, %c0_1] : memref<8x32xf32, #tpu.memory_space<vmem>>, vector<1x32xf32>
    %c2 = arith.constant 2 : index
    %c0_2 = arith.constant 0 : index
    %2 = vector.load %arg7[%c2, %c0_2] : memref<8x32xf32, #tpu.memory_space<vmem>>, vector<1x32xf32>
    %c3 = arith.constant 3 : index
    %c0_3 = arith.constant 0 : index
    %3 = vector.load %arg7[%c3, %c0_3] : memref<8x32xf32, #tpu.memory_space<vmem>>, vector<1x32xf32>
    %c4 = arith.constant 4 : index
    %c0_4 = arith.constant 0 : index
    %4 = vector.load %arg7[%c4, %c0_4] : memref<8x32xf32, #tpu.memory_space<vmem>>, vector<1x32xf32>
    %c5 = arith.constant 5 : index
    %c0_5 = arith.constant 0 : index
    %5 = vector.load %arg7[%c5, %c0_5] : memref<8x32xf32, #tpu.memory_space<vmem>>, vector<1x4xf32>
    %c0_6 = arith.constant 0 : index
    %c0_7 = arith.constant 0 : index
    %6 = vector.load %arg1[%c0_6, %c0_7] : memref<8x16xf32, #tpu.memory_space<vmem>>, vector<8x16xf32>
    %c0_8 = arith.constant 0 : index
    %c0_9 = arith.constant 0 : index
    %7 = vector.load %arg2[%c0_8, %c0_9] : memref<8x4xf32, #tpu.memory_space<vmem>>, vector<8x4xf32>
    %c0_10 = arith.constant 0 : index
    %c0_11 = arith.constant 0 : index
    %8 = vector.load %arg3[%c0_10, %c0_11] : memref<16x32xf32, #tpu.memory_space<vmem>>, vector<16x32xf32>
    %cst = arith.constant dense<0.000000e+00> : vector<8x32xf32>
    %9 = tpu.matmul %6, %8, %cst {dimension_numbers = #tpu.dot_dimension_numbers<[1], [0], [0], [1], [0, 0, 1, 1], [], []>} : vector<8x16xf32>, vector<16x32xf32>, vector<8x32xf32> -> vector<8x32xf32>
    %10 = vector.broadcast %0 : vector<1x32xf32> to vector<8x32xf32>
    %11 = arith.addf %9, %10 : vector<8x32xf32>
    %cst_12 = arith.constant 0.000000e+00 : f32
    %12 = vector.broadcast %cst_12 : f32 to vector<8x32xf32>
    %13 = arith.maximumf %11, %12 : vector<8x32xf32>
    %14 = vector.broadcast %2 : vector<1x32xf32> to vector<8x32xf32>
    %15 = arith.mulf %13, %14 : vector<8x32xf32>
    %16 = vector.broadcast %3 : vector<1x32xf32> to vector<8x32xf32>
    %17 = arith.addf %15, %16 : vector<8x32xf32>
    %c0_13 = arith.constant 0 : index
    %c0_14 = arith.constant 0 : index
    %18 = vector.load %arg4[%c0_13, %c0_14] : memref<4x32xf32, #tpu.memory_space<vmem>>, vector<4x32xf32>
    %cst_15 = arith.constant dense<0.000000e+00> : vector<8x32xf32>
    %19 = tpu.matmul %7, %18, %cst_15 {dimension_numbers = #tpu.dot_dimension_numbers<[1], [0], [0], [1], [0, 0, 1, 1], [], []>} : vector<8x4xf32>, vector<4x32xf32>, vector<8x32xf32> -> vector<8x32xf32>
    %20 = vector.broadcast %1 : vector<1x32xf32> to vector<8x32xf32>
    %21 = arith.addf %19, %20 : vector<8x32xf32>
    %cst_16 = arith.constant 0.000000e+00 : f32
    %22 = vector.broadcast %cst_16 : f32 to vector<8x32xf32>
    %23 = arith.maximumf %21, %22 : vector<8x32xf32>
    %24 = arith.addf %17, %23 : vector<8x32xf32>
    %c0_17 = arith.constant 0 : index
    %c0_18 = arith.constant 0 : index
    %25 = vector.load %arg5[%c0_17, %c0_18] : memref<32x32xf32, #tpu.memory_space<vmem>>, vector<32x32xf32>
    %cst_19 = arith.constant dense<0.000000e+00> : vector<8x32xf32>
    %26 = tpu.matmul %24, %25, %cst_19 {dimension_numbers = #tpu.dot_dimension_numbers<[1], [0], [0], [1], [0, 0, 1, 1], [], []>} : vector<8x32xf32>, vector<32x32xf32>, vector<8x32xf32> -> vector<8x32xf32>
    %27 = vector.broadcast %4 : vector<1x32xf32> to vector<8x32xf32>
    %28 = arith.addf %26, %27 : vector<8x32xf32>
    %29 = math.tanh %28 : vector<8x32xf32>
    %c0_20 = arith.constant 0 : index
    %c0_21 = arith.constant 0 : index
    %30 = vector.load %arg6[%c0_20, %c0_21] : memref<32x4xf32, #tpu.memory_space<vmem>>, vector<32x4xf32>
    %cst_22 = arith.constant dense<0.000000e+00> : vector<8x4xf32>
    %31 = tpu.matmul %29, %30, %cst_22 {dimension_numbers = #tpu.dot_dimension_numbers<[1], [0], [0], [1], [0, 0, 1, 1], [], []>} : vector<8x32xf32>, vector<32x4xf32>, vector<8x4xf32> -> vector<8x4xf32>
    %32 = vector.broadcast %5 : vector<1x4xf32> to vector<8x4xf32>
    %33 = arith.addf %31, %32 : vector<8x4xf32>
    %34 = math.tanh %33 : vector<8x4xf32>
    %c0_23 = arith.constant 0 : index
    %c0_24 = arith.constant 0 : index
    %35 = vector.load %arg8[%c0_23, %c0_24] : memref<8x4xf32, #tpu.memory_space<vmem>>, vector<8x4xf32>
    tpu.vector_store %arg8[%c0_23, %c0_24], %34 {strides = array<i32>} : memref<8x4xf32, #tpu.memory_space<vmem>>, vector<8x4xf32>,
    return
  }
  func.func @transform_0(%arg0: i32) -> (i32, i32) {
    %c0_i32 = arith.constant 0 : i32
    %c0_i32_0 = arith.constant 0 : i32
    return %arg0, %c0_i32 : i32, i32
  }
  func.func @transform_1(%arg0: i32) -> (i32, i32) {
    %c0_i32 = arith.constant 0 : i32
    %c0_i32_0 = arith.constant 0 : i32
    return %arg0, %c0_i32 : i32, i32
  }
  func.func @transform_2(%arg0: i32) -> (i32, i32) {
    %c0_i32 = arith.constant 0 : i32
    %c0_i32_0 = arith.constant 0 : i32
    %c0_i32_1 = arith.constant 0 : i32
    return %c0_i32, %c0_i32_0 : i32, i32
  }
  func.func @transform_3(%arg0: i32) -> (i32, i32) {
    %c0_i32 = arith.constant 0 : i32
    %c0_i32_0 = arith.constant 0 : i32
    %c0_i32_1 = arith.constant 0 : i32
    return %c0_i32, %c0_i32_0 : i32, i32
  }
  func.func @transform_4(%arg0: i32) -> (i32, i32) {
    %c0_i32 = arith.constant 0 : i32
    %c0_i32_0 = arith.constant 0 : i32
    %c0_i32_1 = arith.constant 0 : i32
    return %c0_i32, %c0_i32_0 : i32, i32
  }
  func.func @transform_5(%arg0: i32) -> (i32, i32) {
    %c0_i32 = arith.constant 0 : i32
    %c0_i32_0 = arith.constant 0 : i32
    %c0_i32_1 = arith.constant 0 : i32
    return %c0_i32, %c0_i32_0 : i32, i32
  }
  func.func @transform_6(%arg0: i32) -> (i32, i32) {
    %c0_i32 = arith.constant 0 : i32
    %c0_i32_0 = arith.constant 0 : i32
    %c0_i32_1 = arith.constant 0 : i32
    return %c0_i32, %c0_i32_0 : i32, i32
  }
  func.func @transform_7(%arg0: i32) -> (i32, i32) {
    %c0_i32 = arith.constant 0 : i32
    %c0_i32_0 = arith.constant 0 : i32
    return %arg0, %c0_i32 : i32, i32
  }
}

</mosaic_0001>

<bundles_post_ra>
// kernel: tpu_custom_call.1
= control target key start
LH: loop header
LB: loop body
LE: loop exit
PB: predicated region body
PF: predicated region fallthrough
CT: control target
= control target key end

     0   :  { %12 = vsyncpa [#allocation3], 0  ;;  %s500_s24 = smov [#allocation2]   ;;  %s621_s0 = inlined_call_operand.vmem [shape: f32[8,16], index: 0, kind: input, shape index: {}]   ;;  %s622_s1 = inlined_call_operand.vmem [shape: f32[8,4], index: 1, kind: input, shape index: {}]   ;;  %s623_s2 = inlined_call_operand.vmem [shape: f32[16,32], index: 2, kind: input, shape index: {}]   ;;  %s624_s3 = inlined_call_operand.hbm [shape: f32[4,32], index: 3, kind: input, shape index: {}]   ;;  %s625_s4 = inlined_call_operand.vmem [shape: f32[32,32], index: 4, kind: input, shape index: {}]   ;;  %s626_s5 = inlined_call_operand.vmem [shape: f32[32,4], index: 5, kind: input, shape index: {}]   ;;  %s627_s6 = inlined_call_operand.vmem [shape: f32[8,32], index: 6, kind: input, shape index: {}]   ;;  %s628_s7 = inlined_call_operand.vmem [shape: f32[8,4], index: 7, kind: output, shape index: {}]  }
   0x1   :  { %s25_s25 = sshll.u32 %s500_s24, 4  ;;  %s476_s28 = scalar_lea.hbm %s624_s3, 64  ;;  %s26_s25 = int_to_ptr.vmem [resolvable:$true] %s25_s25 }
   0x2   :  { %p477_p0 = scmp.ne.s32.totalorder %s624_s3, %s476_s28  ;;  %p480_p1 = scmp.lt.u32.totalorder %s476_s28, %s624_s3 }
   0x4   :  { %p482_p2 = pnand %p480_p1, %p477_p0 }
   0x6   :  { %485 = shalt.err (!%p482_p2)
}
   0x7   :  { %s486_s10 = scalar_lea.vmem %s26_s25, 64  ;;  %p491_p4 = scmp.lt.s32.totalorder %s26_s25, %s26_s25 }
   0x8   :  { %p487_p3 = scmp.ne.s32.totalorder %s26_s25, %s486_s10  ;;  %p492_p5 = scmp.lt.s32.totalorder %s486_s10, %s486_s10 }
   0xa   :  { %p493_p6 = por %p492_p5, %p491_p4 }
   0xc   :  { %p494_p7 = pnand %p493_p6, %p487_p3 }
   0xe   :  { %497 = shalt.err (!%p494_p7)
}
   0xf   :  { %28 = dma.hbm_to_vmem [thread:$0]  %s624_s3, 64, %s26_s25, [#allocation3]  }
  0x10   :  { %498 = dma.done.wait [#allocation3], 64  }
  0x11   :  { %499 = vsyncadd [#allocation3], 4294967232  ;;  %v501_v0 = vmov 0.0|0.0   ;;  %vm502_vm0 = vmmov 0   ;;  %v503_v1 = vmov 0.0   ;;  %vm146_vm1 = vcmask 1043456  }
  0x12   :  { %453 = vmatprep.subr.bf16.mxu0 %v501_v0  ;;  %423 = vmatprep.mubr.msk.f32.mxu0 %vm502_vm0, %v503_v1  ;;  %v46_v2 = vld [vmem:[%s623_s2] sm:$0xff]  ;;  %v47_v3 = vld [vmem:[%s623_s2 + $0x8] sm:$0xff]  ;;  %vm142_vm2 = vcmask 31744   ;;  %vm52_vm3 = vcmask 130048   ;;  %v224_v11 = vld [vmem:[%s625_s4 + $0x10] sm:$0xff]  ;;  %vm230_vm4 = vcmask 261120  }
  0x13   :  { %426 = vmatprep.subr.mxu1 %v503_v1  ;;  %428 = vmatprep.mubr.msk.f32.mxu1 %vm502_vm0, %v503_v1  ;;  %v454_v4 = vpack.c.bf16 %v47_v3, %v46_v2  ;;  %v137_v5 = vld [vmem:[#allocation2] sm:$0xf]  ;;  %v223_v9 = vld [vmem:[%s625_s4 + $0x8] sm:$0xff]  ;;  %v225_v12 = vld [vmem:[%s625_s4 + $0x18] sm:$0xff] }
  0x14   :  { %v45_v6 = vld [vmem:[%s622_s1] sm:$0xff]  ;;  %427 = vmatpush3.msk.msra.mxu1 %vm146_vm1, %v137_v5  ;;  %v460_v13 = vpack.c.bf16 %v225_v12, %v224_v11  ;;  %v306_v30 = vld [vmem:[%s626_s5 + $0x8] sm:$0xff]  ;;  %v307_v31 = vld [vmem:[%s626_s5 + $0x10] sm:$0xff] }
  0x15   :  { %455 = vmatpush3.bf16.msra.mxu0 %v454_v4  ;;  %v44_v7 = vld [vmem:[%s621_s0] sm:$0xff]  ;;  %429 = vmatmul.mubr.msk.f32.vlgmr.msra.gmra.mrb[0].mxu1 %vm142_vm2, %v45_v6  ;;  %v308_v33 = vld [vmem:[%s626_s5 + $0x18] sm:$0xff] }
  0x16   :  { %456 = vmatprep.subr.bf16.mxu1 %v501_v0  ;;  %439 = vmatprep.mubr.msk.f32.mxu1 %vm502_vm0, %v503_v1  ;;  %v222_v8 = vld [vmem:[%s625_s4] sm:$0xff]  ;;  %v466_v34 = vpack.c.bf16 %v308_v33, %v307_v31 }
  0x17   :  { %462 = vmatprep.subr.bf16.mxu0 %v501_v0  ;;  %v457_v10 = vpack.c.bf16 %v223_v9, %v222_v8  ;;  %v393_v15 = vld [vmem:[%s627_s6] ss:$0 sm:$0xff]  ;;  %v397_v16 = vld [vmem:[%s627_s6 + $0x1] ss:$0 sm:$0xff]  ;;  %v395_v22 = vld [vmem:[%s627_s6 + $0x2] ss:$0 sm:$0xff] }
  0x18   :  { %424 = vmatmul.mubr.msk.f32.vlgmr.msra.gmra.mrb[0].mxu0 %vm52_vm3, %v44_v7  ;;  %v396_v24 = vld [vmem:[%s627_s6 + $0x3] ss:$0 sm:$0xff]  ;;  %v400_v35 = vld [vmem:[%s627_s6 + $0x4] ss:$0 sm:$0xff]  ;;  %v402_v40 = vld [vmem:[%s627_s6 + $0x5] ss:$0 sm:$0xff] }
  0x19   :  { %450 = vmatprep.mubr.msk.f32.mxu0 %vm502_vm0, %v503_v1  ;;  %458 = vmatpush3.bf16.msra.mxu1 %v457_v10  ;;  %v305_v29 = vld [vmem:[%s626_s5] sm:$0xff] }
  0x1a   :  { %459 = vmatprep.subr.bf16.mxu1 %v501_v0  ;;  %v463_v32 = vpack.c.bf16 %v306_v30, %v305_v29 }
  0x1c   :  { %464 = vmatpush3.bf16.msra.mxu0 %v463_v32 }
  0x1d   :  { %461 = vmatpush3.bf16.msra.mxu1 %v460_v13  ;;  %465 = vmatprep.subr.bf16.mxu0 %v501_v0 }
  0x20   :  { %467 = vmatpush3.bf16.msra.mxu0 %v466_v34 }
  0xe8   :  { %v216_v14 = vpop.f32.mrb[0].mxu1 }
  0xe9   :  { %v430_v17 = vpop.f32.mrb[1].mxu1  ;;  %v217_v21 = vadd.f32 %v397_v16, %v216_v14 }
  0xeb   :  { %v122_v18 = vpop.f32.mrb[0].mxu0  ;;  %v220_v26 = vmax.f32 %v217_v21, 0.0 }
  0xec   :  { %v123_v19 = vadd.f32 %v393_v15, %v122_v18  ;;  %v425_v20 = vpop.f32.mrb[1].mxu0 }
  0xee   :  { %v126_v23 = vmax.f32 %v123_v19, 0.0 }
  0xf0   :  { %v131_v25 = vmul.f32 %v395_v22, %v126_v23 }
  0xf2   :  { %v136_v27 = vadd.f32 %v396_v24, %v131_v25 }
  0xf4   :  { %v221_v28 = vadd.f32 %v220_v26, %v136_v27 }
  0xf6   :  { %440 = vmatmul.mubr.msk.f32.vlgmr.msra.gmra.mrb[2].mxu1 %vm230_vm4, %v221_v28 }
 0x1c9   :  { %v300_v36 = vpop.f32.mrb[2].mxu1 }
 0x1ca   :  { %v301_v37 = vadd.f32 %v400_v35, %v300_v36  ;;  %v441_v38 = vpop.f32.mrb[3].mxu1 }
 0x1cc   :  { %472 = vtanh.f32 %v301_v37 }
 0x1d6   :  { %v473_v39 = vpop.eup %472 }
 0x1d7   :  { %451 = vmatmul.mubr.msk.f32.vlgmr.msra.gmra.mrb[2].mxu0 %vm230_vm4, %v473_v39 }
 0x2aa   :  { %v382_v41 = vpop.f32.mrb[2].mxu0 }
 0x2ab   :  { %v383_v42 = vadd.f32 %v402_v40, %v382_v41  ;;  %v452_v43 = vpop.f32.mrb[3].mxu0 }
 0x2ad   :  { %474 = vtanh.f32 %v383_v42 }
 0x2b7   :  { %v475_v44 = vpop.eup %474 }
 0x2b8   :  { %387 = vst.msk [vmem:[%s628_s7] sm:$0xff] %vm142_vm2, %v475_v44 }
 0x2b9   :  { %392 = vsyncpa [#allocation3], 1 }

</bundles_post_ra>
